<compile_context>
chip_gen: v7x
topology: tpu7x:2x2x1
jax: 0.10.0
libtpu: 0.0.40
codegen_flags: <defaults>
</compile_context>

<pallas_src>
import math

import jax
import jax.numpy as jnp
from jax import lax
from jax.experimental import pallas as pl
from jax.experimental.pallas import tpu as pltpu


# Contract on the last axis of both operands: (M, K) x (N, K) -> (M, N).
# Lets the MXU consume the PyTorch-layout (out, in) weight directly.
_DN = (((1,), (1,)), ((), ()))


def _swiglu_kernel(x_ref, w1_ref, w2_ref, w3_ref, o_ref):
    x = x_ref[...]                                    # (tm, C)
    w1 = w1_ref[...]                                  # (H, C)
    w2 = w2_ref[...]                                  # (H, C)
    w3 = w3_ref[...]                                  # (C, H)

    x1 = lax.dot_general(x, w1, _DN, preferred_element_type=jnp.float32)  # (tm, H)
    x2 = lax.dot_general(x, w2, _DN, preferred_element_type=jnp.float32)  # (tm, H)

    # silu(x1) = x1 * sigmoid(x1); exp + approx reciprocal both run on the EUP.
    sig = pl.reciprocal(1.0 + jnp.exp(-x1), approx=True)
    h = (x1 * sig) * x2                               # (tm, H), f32

    o_ref[...] = lax.dot_general(
        h.astype(w3.dtype), w3, _DN, preferred_element_type=jnp.float32
    ).astype(o_ref.dtype)


def swiglu(x, w1, w2, w3, *, tm=128):
    """Fused SwiGLU forward.

    x  : (..., in_features)                     activations
    w1 : (hidden_features, in_features)         PyTorch nn.Linear weight layout
    w2 : (hidden_features, in_features)
    w3 : (in_features, hidden_features)
    returns (..., in_features)
    """
    *lead, C = x.shape
    H = w1.shape[0]
    M = math.prod(lead)
    x2d = x.reshape(M, C)

    tm = min(tm, M)
    if M % tm != 0:            # keep blocks exact; fall back to one row-block
        tm = M
    grid = (M // tm,)

    out = pl.pallas_call(
        _swiglu_kernel,
        out_shape=jax.ShapeDtypeStruct((M, C), x.dtype),
        grid=grid,
        in_specs=[
            pl.BlockSpec((tm, C), lambda i: (i, 0)),   # x row-tile
            pl.BlockSpec((H, C), lambda i: (0, 0)),    # w1: resident in VMEM
            pl.BlockSpec((H, C), lambda i: (0, 0)),    # w2: resident in VMEM
            pl.BlockSpec((C, H), lambda i: (0, 0)),    # w3: resident in VMEM
        ],
        out_specs=pl.BlockSpec((tm, C), lambda i: (i, 0)),
        compiler_params=pltpu.CompilerParams(
            dimension_semantics=("parallel",)),
    )(x2d, w1, w2, w3)
    return out.reshape(*lead, C)


if __name__ == "__main__":
    B, T = 2, 128                 # batch, seq
    IN_FEATURES = 128             # lane-dense output width (multiple of 128)
    HIDDEN_FEATURES = 256

    key = jax.random.PRNGKey(0)
    kx, k1, k2, k3 = jax.random.split(key, 4)

    x = jax.random.normal(kx, (B, T, IN_FEATURES), dtype=jnp.float32)
    # PyTorch nn.Linear weight layout: (out_features, in_features); bias=False.
    w1 = 0.02 * jax.random.normal(k1, (HIDDEN_FEATURES, IN_FEATURES), jnp.float32)
    w2 = 0.02 * jax.random.normal(k2, (HIDDEN_FEATURES, IN_FEATURES), jnp.float32)
    w3 = 0.02 * jax.random.normal(k3, (IN_FEATURES, HIDDEN_FEATURES), jnp.float32)

    y = swiglu(x, w1, w2, w3)
    jax.block_until_ready(y)

    # pure-JAX reference (matches the PyTorch forward semantics)
    x1 = x @ w1.T
    x2 = x @ w2.T
    ref = (jax.nn.silu(x1) * x2) @ w3.T

    assert y.shape == (B, T, IN_FEATURES)
    assert jnp.allclose(y, ref, atol=1e-2, rtol=1e-2), float(jnp.max(jnp.abs(y - ref)))
    print("KERNEL_OK")
</pallas_src>

<mosaic_0001>
module attributes {stable_mosaic.version = 11 : i64} {
  func.func @_swiglu_kernel(%arg0: i32, %arg1: memref<128x128xf32, #tpu.memory_space<vmem>>, %arg2: memref<256x128xf32, #tpu.memory_space<vmem>>, %arg3: memref<256x128xf32, #tpu.memory_space<vmem>>, %arg4: memref<128x256xf32, #tpu.memory_space<vmem>>, %arg5: memref<128x128xf32, #tpu.memory_space<vmem>>) attributes {dimension_semantics = [#tpu.dimension_semantics<parallel>], iteration_bounds = array<i64: 2>, scalar_prefetch = 0 : i64, scratch_operands = 0 : i64, tpu.core_type = #tpu.core_type<tc>, window_params = [{transform_indices = @transform_0, window_bounds = array<i64: 128, 128>}, {pipeline_mode = #tpu.pipeline_mode<synchronous>, transform_indices = @transform_1, window_bounds = array<i64: 256, 128>}, {pipeline_mode = #tpu.pipeline_mode<synchronous>, transform_indices = @transform_2, window_bounds = array<i64: 256, 128>}, {pipeline_mode = #tpu.pipeline_mode<synchronous>, transform_indices = @transform_3, window_bounds = array<i64: 128, 256>}, {transform_indices = @transform_4, window_bounds = array<i64: 128, 128>}]} {
    %c0 = arith.constant 0 : index
    %c0_0 = arith.constant 0 : index
    %0 = vector.load %arg1[%c0, %c0_0] : memref<128x128xf32, #tpu.memory_space<vmem>>, vector<128x128xf32>
    %c0_1 = arith.constant 0 : index
    %c0_2 = arith.constant 0 : index
    %1 = vector.load %arg2[%c0_1, %c0_2] : memref<256x128xf32, #tpu.memory_space<vmem>>, vector<256x128xf32>
    %c0_3 = arith.constant 0 : index
    %c0_4 = arith.constant 0 : index
    %2 = vector.load %arg3[%c0_3, %c0_4] : memref<256x128xf32, #tpu.memory_space<vmem>>, vector<256x128xf32>
    %c0_5 = arith.constant 0 : index
    %c0_6 = arith.constant 0 : index
    %3 = vector.load %arg4[%c0_5, %c0_6] : memref<128x256xf32, #tpu.memory_space<vmem>>, vector<128x256xf32>
    %cst = arith.constant dense<0.000000e+00> : vector<128x256xf32>
    %4 = tpu.matmul %0, %1, %cst {dimension_numbers = #tpu.dot_dimension_numbers<[1], [1], [0], [0], [0, 0, 1, 0], [], []>} : vector<128x128xf32>, vector<256x128xf32>, vector<128x256xf32> -> vector<128x256xf32>
    %cst_7 = arith.constant dense<0.000000e+00> : vector<128x256xf32>
    %5 = tpu.matmul %0, %2, %cst_7 {dimension_numbers = #tpu.dot_dimension_numbers<[1], [1], [0], [0], [0, 0, 1, 0], [], []>} : vector<128x128xf32>, vector<256x128xf32>, vector<128x256xf32> -> vector<128x256xf32>
    %cst_8 = arith.constant 0.000000e+00 : f32
    %6 = vector.broadcast %cst_8 : f32 to vector<128x256xf32>
    %7 = arith.subf %6, %4 : vector<128x256xf32>
    %8 = math.exp %7 : vector<128x256xf32>
    %cst_9 = arith.constant 1.000000e+00 : f32
    %9 = vector.broadcast %cst_9 : f32 to vector<128x256xf32>
    %10 = arith.addf %9, %8 : vector<128x256xf32>
    %11 = tpu.reciprocal %10 {approx = true} : vector<128x256xf32> -> vector<128x256xf32>
    %12 = arith.mulf %4, %11 : vector<128x256xf32>
    %13 = arith.mulf %12, %5 : vector<128x256xf32>
    %cst_10 = arith.constant dense<0.000000e+00> : vector<128x128xf32>
    %14 = tpu.matmul %13, %3, %cst_10 {dimension_numbers = #tpu.dot_dimension_numbers<[1], [1], [0], [0], [0, 0, 1, 0], [], []>} : vector<128x256xf32>, vector<128x256xf32>, vector<128x128xf32> -> vector<128x128xf32>
    %c0_11 = arith.constant 0 : index
    %c0_12 = arith.constant 0 : index
    %15 = vector.load %arg5[%c0_11, %c0_12] : memref<128x128xf32, #tpu.memory_space<vmem>>, vector<128x128xf32>
    tpu.vector_store %arg5[%c0_11, %c0_12], %14 {strides = array<i32>} : memref<128x128xf32, #tpu.memory_space<vmem>>, vector<128x128xf32>,
    return
  }
  func.func @transform_0(%arg0: i32) -> (i32, i32) {
    %c0_i32 = arith.constant 0 : i32
    %c0_i32_0 = arith.constant 0 : i32
    return %arg0, %c0_i32 : i32, i32
  }
  func.func @transform_1(%arg0: i32) -> (i32, i32) {
    %c0_i32 = arith.constant 0 : i32
    %c0_i32_0 = arith.constant 0 : i32
    %c0_i32_1 = arith.constant 0 : i32
    return %c0_i32, %c0_i32_0 : i32, i32
  }
  func.func @transform_2(%arg0: i32) -> (i32, i32) {
    %c0_i32 = arith.constant 0 : i32
    %c0_i32_0 = arith.constant 0 : i32
    %c0_i32_1 = arith.constant 0 : i32
    return %c0_i32, %c0_i32_0 : i32, i32
  }
  func.func @transform_3(%arg0: i32) -> (i32, i32) {
    %c0_i32 = arith.constant 0 : i32
    %c0_i32_0 = arith.constant 0 : i32
    %c0_i32_1 = arith.constant 0 : i32
    return %c0_i32, %c0_i32_0 : i32, i32
  }
  func.func @transform_4(%arg0: i32) -> (i32, i32) {
    %c0_i32 = arith.constant 0 : i32
    %c0_i32_0 = arith.constant 0 : i32
    return %arg0, %c0_i32 : i32, i32
  }
}

</mosaic_0001>

<bundles_post_ra>
// kernel: tpu_custom_call.1
= control target key start
LH: loop header
LB: loop body
LE: loop exit
PB: predicated region body
PF: predicated region fallthrough
CT: control target
= control target key end

     0   :  { %9 = vsyncpa [#allocation3], 0  ;;  %s2435_s0 = inlined_call_operand.hbm [shape: f32[256,128], index: 0, kind: input, shape index: {}]   ;;  %s2436_s1 = inlined_call_operand.hbm [shape: f32[256,128], index: 1, kind: input, shape index: {}]   ;;  %s2437_s2 = inlined_call_operand.hbm [shape: f32[256,128], index: 2, kind: input, shape index: {}]   ;;  %s2438_s3 = inlined_call_operand.hbm [shape: f32[128,256], index: 3, kind: input, shape index: {}]   ;;  %s2439_s4 = inlined_call_operand.hbm [shape: f32[256,128], index: 4, kind: output, shape index: {}]  }
   0x1   :  { %11 = vsyncpa [#allocation3 + $0x1], 0 }
   0x2   :  { %12 = vsyncpa [#allocation6], 0 }
   0x3   :  { %13 = vsyncpa [#allocation9], 0 }
   0x4   :  { %14 = vsyncpa [#allocation4], 0 }
   0x5   :  { %16 = vsyncpa [#allocation4 + $0x1], 0  ;;  %s1896_s15 = smov 0   ;;  %s1898_s16 = smov 0  }
   0x6   :  { %s1900_s17 = smov 0   ;;  %s1902_s18 = smov 0  }
   0x7 LB: > { %s1917_s19 = sadd.s32 4294967295, %s1858_s18   ;;  %s1197_s20 = sadd.s32 4294967294, %s1858_s18   ;;  %s1858_s18 = sphi %s1902_s18, %s2462_s18   ;;  %s1854_s17 = sphi %s1900_s17, %s2461_s17   ;;  %s1850_s16 = sphi %s1898_s16, %s2460_s16   ;;  %s1846_s15 = sphi %s1896_s15, %s2459_s15  }
   0x8   : > { %p42_p0 = scmp.ne.s32.totalorder %s1850_s16, %s1846_s15  ;;  %p2440_p1 = scmp.eq.s32.totalorder %s1917_s19, 0 }
   0x9   : > { %p135_p3 = scmp.eq.s32.totalorder %s1197_s20, 1  ;;  %p1198_p5 = scmp.ge.s32.totalorder %s1858_s18, 1 }
   0xa   : > { %p1926_p4 = por %p2440_p1, %p42_p0  ;;  %p142_p7 = scmp.lt.s32.totalorder %s1858_s18, 3 }
   0xb   : > { %p1931_p6 = por %p135_p3, %p42_p0  ;;  %s1860_s24 = smov [#allocation5]  }
   0xc   : > { %s2443_s21 = scalar_select %p1926_p4, 1, 0 }
   0xd   : > { %s2444_s22 = scalar_select %p1931_p6, 1, 0 }
   0xe   : > { %p1936_p8 = pnand %p1198_p5, %p142_p7  ;;  %s154_s25 = sshll.u32 %s1860_s24, 4  ;;  %s1940_s25 = int_to_ptr.vmem [resolvable:$true] %s154_s25 }
   0xf   : > { %s1861_s27 = smov [#allocation7]   ;;  %s1862_s29 = smov [#allocation8]  }
  0x10   : > { %s2445_s23 = scalar_select %p1936_p8, 1, 0 }
  0x11   : > { %p1475_p9 = pneg %p1936_p8  ;;  %s167_s28 = sshll.u32 %s1861_s27, 4  ;;  %s1951_s28 = int_to_ptr.vmem [resolvable:$true] %s167_s28 }
  0x12   : > { %s1953_s30 = sshll.u32 %s1862_s29, 4  ;;  %s1670_s7 = scalar_lea.hbm %s2436_s1, 4096  ;;  %s181_s30 = int_to_ptr.vmem [resolvable:$true] %s1953_s30 }
  0x13   : > { %p1947_p11 = pnand %p1475_p9, %p2440_p1  ;;  %p1671_p12 = scmp.ne.s32.totalorder %s2436_s1, %s1670_s7 }
  0x14   : > { %p1677_p5 = scmp.lt.u32.totalorder %s1670_s7, %s2436_s1 }
  0x15   : > { %p1963_p13 = pneg %p1947_p11 }
  0x17   : > { %p1673_p0 = pnand %p1963_p13, %p1671_p12 }
  0x19   : > { %p1674_p3 = pneg %p1673_p0 }
  0x1b   : > { %p1679_p7 = pnand %p1677_p5, %p1674_p3 }
  0x1d   : > { %1682 = shalt.err (!%p1679_p7)
}
  0x1e   : > { %s1683_s13 = scalar_lea.vmem %s1940_s25, 4096  ;;  %p1691_p2 = scmp.lt.s32.totalorder %s1940_s25, %s1940_s25 }
  0x1f   : > { %p1684_p9 = scmp.ne.s32.totalorder %s1940_s25, %s1683_s13  ;;  %p1692_p6 = scmp.lt.s32.totalorder %s1683_s13, %s1683_s13 }
  0x21   : > { %p1686_p10 = pnand %p1684_p9, %p1963_p13  ;;  %p1693_p12 = por %p1692_p6, %p1691_p2 }
  0x23   : > { %p1687_p1 = pneg %p1686_p10 }
  0x25   : > { %p1694_p0 = pnand %p1693_p12, %p1687_p1 }
  0x27   : > { %1697 = shalt.err (!%p1694_p0)
}
  0x28   : > { %s1863_s14 = smov 128   ;;  %s1864_s20 = smov 8  }
  0x29   : > { %1478 = dma.hbm_to_vmem [thread:$0]  (!%p1947_p11), %s2436_s1, 4096, %s1940_s25, [#allocation6], %s1863_s14, %s1863_s14, %s1864_s20  }
  0x2a   : > { %s1698_s6 = scalar_lea.hbm %s2437_s2, 4096 }
  0x2b   : > { %p1699_p1 = scmp.ne.s32.totalorder %s2437_s2, %s1698_s6  ;;  %p1705_p10 = scmp.lt.u32.totalorder %s1698_s6, %s2437_s2 }
  0x2d   : > { %p1701_p2 = pnand %p1699_p1, %p1963_p13 }
  0x2f   : > { %p1702_p6 = pneg %p1701_p2 }
  0x31   : > { %p1707_p3 = pnand %p1705_p10, %p1702_p6 }
  0x33   : > { %1710 = shalt.err (!%p1707_p3)
}
  0x34   : > { %s1711_s25 = scalar_lea.vmem %s1951_s28, 4096  ;;  %p1719_p12 = scmp.lt.s32.totalorder %s1951_s28, %s1951_s28 }
  0x35   : > { %p1712_p5 = scmp.ne.s32.totalorder %s1951_s28, %s1711_s25  ;;  %p1720_p0 = scmp.lt.s32.totalorder %s1711_s25, %s1711_s25 }
  0x37   : > { %p1714_p7 = pnand %p1712_p5, %p1963_p13  ;;  %p1721_p1 = por %p1720_p0, %p1719_p12 }
  0x39   : > { %p1715_p9 = pneg %p1714_p7 }
  0x3b   : > { %p1722_p2 = pnand %p1721_p1, %p1715_p9 }
  0x3d   : > { %1725 = shalt.err (!%p1722_p2)
}
  0x3e   : > { %1481 = dma.hbm_to_vmem [thread:$0]  (!%p1947_p11), %s2437_s2, 4096, %s1951_s28, [#allocation6], %s1863_s14, %s1863_s14, %s1864_s20  }
  0x3f   : > { %s1726_s29 = scalar_lea.hbm %s2438_s3, 4096 }
  0x40   : > { %p1727_p6 = scmp.ne.s32.totalorder %s2438_s3, %s1726_s29  ;;  %p1733_p5 = scmp.lt.u32.totalorder %s1726_s29, %s2438_s3 }
  0x42   : > { %p1729_p10 = pnand %p1727_p6, %p1963_p13 }
  0x44   : > { %p1730_p3 = pneg %p1729_p10 }
  0x46   : > { %p1735_p7 = pnand %p1733_p5, %p1730_p3 }
  0x48   : > { %1738 = shalt.err (!%p1735_p7)
}
  0x49   : > { %s1739_s9 = scalar_lea.vmem %s181_s30, 4096  ;;  %p1747_p1 = scmp.lt.s32.totalorder %s181_s30, %s181_s30 }
  0x4a   : > { %p1740_p9 = scmp.ne.s32.totalorder %s181_s30, %s1739_s9  ;;  %p1748_p2 = scmp.lt.s32.totalorder %s1739_s9, %s1739_s9 }
  0x4c   : > { %p1742_p12 = pnand %p1740_p9, %p1963_p13  ;;  %p1749_p4 = por %p1748_p2, %p1747_p1 }
  0x4e   : > { %p1743_p0 = pneg %p1742_p12 }
  0x50   : > { %p1750_p8 = pnand %p1749_p4, %p1743_p0 }
  0x52   : > { %1753 = shalt.err (!%p1750_p8)
}
  0x53   : > { %s1865_s28 = smov 256   ;;  %s1866_s10 = smov 16  }
  0x54   : > { %1484 = dma.hbm_to_vmem [thread:$0]  (!%p1947_p11), %s2438_s3, 4096, %s181_s30, [#allocation9], %s1865_s28, %s1865_s28, %s1866_s10  }
  0x55   : > { %s2033_s12 = sadd.s32 1, %s1858_s18   ;;  %s29_s24 = sadd.s32 1, %s1854_s17 }
  0x56   : > { %s26_s13 = ssub.s32 %s1858_s18, %s2033_s12  ;;  %p36_p8 = scmp.ne.s32.totalorder %s1854_s17, %s1850_s16 }
  0x57   : > { %p27_p4 = scmp.eq.s32.totalorder %s26_s13, 0  ;;  %p37_p13 = scmp.eq.s32.totalorder %s1858_s18, 0 }
  0x58   : > { %p1496_p6 = scmp.lt.s32.totalorder %s1858_s18, 2  ;;  %p2448_p3 = scmp.eq.s32.totalorder %s1917_s19, 1 }
  0x59   : > { %s2043_s27 = scalar_select %p27_p4, %s1854_s17, %s29_s24  }
  0x5a   : > { %p38_p10 = por %p37_p13, %p36_p8  ;;  %p2047_p5 = por %p2448_p3, %p36_p8 }
  0x5b   : > { %s194_s26 = sand.u32 1, %s1854_s17   ;;  %s1217_s5 = sshll.u32 %s1858_s18, 11 }
  0x5c   : > { %s1203_s30 = sshll.u32 %s194_s26, 7  ;;  %s2056_s8 = scalar_lea.hbm %s2435_s0, %s1217_s5 }
  0x5d   : > { %s198_s9 = scalar_lea.vmem [#allocation2], %s1203_s30  ;;  %p2058_p11 = pnand %p1496_p6, %p38_p10 }
  0x5e   : > { %s205_s28 = sshll.u32 %s198_s9, 4  ;;  %s2064_s11 = scalar_lea.sflag [#allocation3], %s194_s26  ;;  %s2062_s28 = int_to_ptr.vmem [resolvable:$true] %s205_s28 }
  0x5f   : > { %s1754_s25 = scalar_lea.hbm %s2056_s8, 2048  ;;  %p1756_p9 = pneg %p2058_p11 }
  0x60   : > { %p1755_p7 = scmp.ne.s32.totalorder %s2056_s8, %s1754_s25  ;;  %s1759_s5 = scalar_lea.hbm %s2435_s0, 4096 }
  0x61   : > { %p1760_p1 = scmp.lt.u32.totalorder %s2056_s8, %s2435_s0  ;;  %p1761_p2 = scmp.lt.u32.totalorder %s1759_s5, %s1754_s25 }
  0x62   : > { %p1757_p12 = pnand %p1756_p9, %p1755_p7  ;;  %p1763_p8 = scmp.lt.u32.totalorder %s1754_s25, %s2056_s8 }
  0x63   : > { %p1762_p4 = por %p1761_p2, %p1760_p1 }
  0x64   : > { %p1758_p0 = pneg %p1757_p12 }
  0x65   : > { %p1764_p13 = por %p1763_p8, %p1762_p4 }
  0x67   : > { %p1765_p6 = pnand %p1764_p13, %p1758_p0 }
  0x69   : > { %1768 = shalt.err (!%p1765_p6)
}
  0x6a   : > { %s1769_s26 = scalar_lea.vmem %s2062_s28, 2048  ;;  %s1867_s7 = smov [#allocation2]  }
  0x6b   : > { %p1770_p10 = scmp.ne.s32.totalorder %s2062_s28, %s1769_s26  ;;  %s1774_s9 = sshll.u32 %s1867_s7, 4  ;;  %s1775_s9 = int_to_ptr.vmem [resolvable:$false] %s1774_s9 }
  0x6c   : > { %s1776_s13 = scalar_lea.vmem %s1775_s9, 4096  ;;  %p1777_p12 = scmp.lt.s32.totalorder %s2062_s28, %s1775_s9 }
  0x6d   : > { %p1772_p3 = pnand %p1770_p10, %p1756_p9  ;;  %p1778_p1 = scmp.lt.s32.totalorder %s1776_s13, %s1769_s26 }
  0x6f   : > { %p1773_p7 = pneg %p1772_p3  ;;  %p1779_p2 = por %p1778_p1, %p1777_p12 }
  0x71   : > { %p1780_p4 = pnand %p1779_p2, %p1773_p7 }
  0x73   : > { %1783 = shalt.err (!%p1780_p4)
}
  0x74   : > { %1488 = dma.hbm_to_vmem [thread:$0]  (!%p2058_p11), %s2056_s8, 2048, %s2062_s28, %s2064_s11, %s1863_s14, %s1863_s14, %s1864_s20  }
  0x75   : > { %p2451_p9 = scmp.ne.s32.totalorder %s2445_s23, 0 }
  0x76   : > { %s2098_s25 = sand.u32 (!%p2451_p9), 1, %s1850_s16   ;;  %p2452_p0 = scmp.ne.s32.totalorder (!%p2451_p9), %s2443_s21, 0 }
  0x77   : > { %217 = sbr.rel (%p2451_p9) target bundleno = 737 (0x2e1), region = 36  ;;  %s1207_s24 = sshll.u32 (!%p2451_p9), %s2098_s25, 7 }
  0x78   : > { %s220_s5 = scalar_lea.sflag (!%p2451_p9), [#allocation3], %s2098_s25  ;;  %s2104_s10 = scalar_lea.vmem (!%p2451_p9), [#allocation2], %s1207_s24 }
  0x7e   : > { %1829 = dma.done.wait (%p2452_p0), %s220_s5, 2048  }
  0x7f   : > { %1831 = vsyncadd (%p2452_p0), %s220_s5, 4294965248  ;;  %p2453_p11 = scmp.eq.s32.totalorder %s1917_s19, 0 }
  0x81   : > { %1833 = dma.done.wait (%p2453_p11), [#allocation6], 8192   ;;  %p2454_p8 = pmov %p2453_p11 }
  0x83   : > { %1835 = vsyncadd (%p2454_p8), [#allocation6], 4294959104  ;;  %p2455_p13 = pmov %p2454_p8 }
  0x84   : > { %p2456_p6 = pmov %p2454_p8 }
  0x85   : > { %1837 = dma.done.wait (%p2455_p13), [#allocation9], 4096  }
  0x86   : > { %1839 = vsyncadd (%p2456_p6), [#allocation9], 4294963200  ;;  %v294_v0 = vld [vmem:[#allocation5 + $0x80] sm:$0xff]  ;;  %v295_v1 = vld [vmem:[#allocation5 + $0x88] sm:$0xff]  ;;  %s2366_s21 = scalar_lea.vmem [#allocation10], %s1207_s24  ;;  %s1218_s23 = sshll.u32 %s1917_s19, 11 }
  0x87   : > { %v278_v2 = vld [vmem:[#allocation5] sm:$0xff]  ;;  %v1347_v3 = vpack.c.bf16 %v295_v1, %v294_v0  ;;  %v279_v4 = vld [vmem:[#allocation5 + $0x8] sm:$0xff]  ;;  %v296_v5 = vld [vmem:[#allocation5 + $0x90] sm:$0xff]  ;;  %s1095_s14 = sshll.u32 %s2366_s21, 4  ;;  %s2388_s28 = scalar_lea.hbm %s2439_s4, %s1218_s23  ;;  %s2390_s14 = int_to_ptr.vmem [resolvable:$true] %s1095_s14 }
  0x88   : > { %v297_v6 = vld [vmem:[#allocation5 + $0x98] sm:$0xff]  ;;  %v1349_v7 = vpack.c.bf16 %v279_v4, %v278_v2  ;;  %v280_v9 = vld [vmem:[#allocation5 + $0x10] sm:$0xff]  ;;  %v298_v11 = vld [vmem:[#allocation5 + $0xa0] sm:$0xff]  ;;  %s1082_s11 = scalar_lea.sflag [#allocation4], %s2098_s25  ;;  %s1784_s30 = scalar_lea.vmem %s2390_s14, 2048 }
  0x89   : > { %v1351_v8 = vpack.c.bf16 %v297_v6, %v296_v5  ;;  %1348 = vmatprep.subr.bf16.mxu0 %v1347_v3  ;;  %v281_v10 = vld [vmem:[#allocation5 + $0x18] sm:$0xff]  ;;  %v326_v12 = vld [vmem:[#allocation7 + $0x80] sm:$0xff]  ;;  %v327_v13 = vld [vmem:[#allocation7 + $0x88] sm:$0xff]  ;;  %p1785_p10 = scmp.ne.s32.totalorder %s2390_s14, %s1784_s30  ;;  %s1868_s19 = smov [#allocation10]  }
  0x8a   : > { %1350 = vmatpush3.bf16.xpose.msra.mxu0 %v1349_v7  ;;  %v299_v14 = vld [vmem:[#allocation5 + $0xa8] sm:$0xff]  ;;  %v1379_v15 = vpack.c.bf16 %v327_v13, %v326_v12  ;;  %v310_v16 = vld [vmem:[#allocation7] sm:$0xff]  ;;  %v1353_v19 = vpack.c.bf16 %v281_v10, %v280_v9  ;;  %v328_v20 = vld [vmem:[#allocation7 + $0x90] sm:$0xff]  ;;  %s1788_s6 = sshll.u32 %s1868_s19, 4  ;;  %s1789_s6 = int_to_ptr.vmem [resolvable:$false] %s1788_s6 }
  0x8b   : > { %1352 = vmatprep.subr.bf16.mxu0 %v1351_v8  ;;  %v311_v17 = vld [vmem:[#allocation7 + $0x8] sm:$0xff]  ;;  %v329_v21 = vld [vmem:[#allocation7 + $0x98] sm:$0xff]  ;;  %v1355_v22 = vpack.c.bf16 %v299_v14, %v298_v11  ;;  %v312_v24 = vld [vmem:[#allocation7 + $0x10] sm:$0xff]  ;;  %p1786_p3 = pnand %p1785_p10, %p2047_p5  ;;  %s1790_s26 = scalar_lea.vmem %s1789_s6, 4096 }
  0x8c   : > { %v1381_v18 = vpack.c.bf16 %v311_v17, %v310_v16  ;;  %1380 = vmatprep.subr.bf16.mxu1 %v1379_v15  ;;  %v1383_v23 = vpack.c.bf16 %v329_v21, %v328_v20  ;;  %v313_v25 = vld [vmem:[#allocation7 + $0x18] sm:$0xff]  ;;  %v330_v26 = vld [vmem:[#allocation7 + $0xa0] sm:$0xff]  ;;  %v331_v27 = vld [vmem:[#allocation7 + $0xa8] sm:$0xff]  ;;  %p1791_p12 = scmp.lt.s32.totalorder %s2390_s14, %s1789_s6  ;;  %p1792_p1 = scmp.lt.s32.totalorder %s1790_s26, %s1784_s30 }
  0x8d   : > { %v282_v28 = vld [vmem:[#allocation5 + $0x20] sm:$0xff]  ;;  %v283_v29 = vld [vmem:[#allocation5 + $0x28] sm:$0xff]  ;;  %v1385_v30 = vpack.c.bf16 %v313_v25, %v312_v24  ;;  %v300_v31 = vld [vmem:[#allocation5 + $0xb0] sm:$0xff]  ;;  %v1387_v33 = vpack.c.bf16 %v331_v27, %v330_v26  ;;  %p1787_p7 = pneg %p1786_p3 }
  0x8e   : > { %1382 = vmatpush3.bf16.xpose.msra.mxu1 %v1381_v18  ;;  %v301_v32 = vld [vmem:[#allocation5 + $0xb8] sm:$0xff]  ;;  %v1357_v34 = vpack.c.bf16 %v283_v29, %v282_v28  ;;  %v2119_v36 = vld [vmem:[%s2104_s10] sm:$0xff]  ;;  %v315_v38 = vld [vmem:[#allocation7 + $0x28] sm:$0xff]  ;;  %p1793_p2 = por %p1792_p1, %p1791_p12 }
  0x8f   : > { %1384 = vmatprep.subr.bf16.mxu1 %v1383_v23  ;;  %v1359_v35 = vpack.c.bf16 %v301_v32, %v300_v31  ;;  %v314_v37 = vld [vmem:[#allocation7 + $0x20] sm:$0xff]  ;;  %1251 = vmatprep.mubr.f32.mxu0 %v2119_v36  ;;  %v332_v39 = vld [vmem:[#allocation7 + $0xb0] sm:$0xff]  ;;  %v333_v40 = vld [vmem:[#allocation7 + $0xb8] sm:$0xff] }
  0x90   : > { %1315 = vmatprep.mubr.f32.mxu1 %v2119_v36  ;;  %v284_v41 = vld [vmem:[#allocation5 + $0x30] sm:$0xff]  ;;  %v285_v42 = vld [vmem:[#allocation5 + $0x38] sm:$0xff]  ;;  %v1389_v43 = vpack.c.bf16 %v315_v38, %v314_v37  ;;  %v302_v44 = vld [vmem:[#allocation5 + $0xc0] sm:$0xff]  ;;  %v1391_v46 = vpack.c.bf16 %v333_v40, %v332_v39  ;;  %p1794_p4 = pnand %p1793_p2, %p1787_p7 }
  0x91   : > { %v303_v45 = vld [vmem:[#allocation5 + $0xc8] sm:$0xff]  ;;  %v1361_v47 = vpack.c.bf16 %v285_v42, %v284_v41  ;;  %v316_v49 = vld [vmem:[#allocation7 + $0x30] sm:$0xff]  ;;  %v317_v50 = vld [vmem:[#allocation7 + $0x38] sm:$0xff] }
  0x92   : > { %1354 = vmatpush3.bf16.xpose.msra.mxu0 %v1353_v19  ;;  %v1363_v48 = vpack.c.bf16 %v303_v45, %v302_v44  ;;  %v334_v51 = vld [vmem:[#allocation7 + $0xc0] sm:$0xff]  ;;  %v335_v52 = vld [vmem:[#allocation7 + $0xc8] sm:$0xff]  ;;  %v1393_v55 = vpack.c.bf16 %v317_v50, %v316_v49  ;;  %v304_v56 = vld [vmem:[#allocation5 + $0xd0] sm:$0xff] }
  0x93   : > { %1356 = vmatprep.subr.bf16.mxu0 %v1355_v22  ;;  %v286_v53 = vld [vmem:[#allocation5 + $0x40] sm:$0xff]  ;;  %v287_v54 = vld [vmem:[#allocation5 + $0x48] sm:$0xff]  ;;  %v305_v57 = vld [vmem:[#allocation5 + $0xd8] sm:$0xff]  ;;  %v1395_v58 = vpack.c.bf16 %v335_v52, %v334_v51 }
  0x94   : > { %v1365_v59 = vpack.c.bf16 %v287_v54, %v286_v53  ;;  %v1367_v60 = vpack.c.bf16 %v305_v57, %v304_v56  ;;  %v318_v61 = vld [vmem:[#allocation7 + $0x40] sm:$0xff]  ;;  %v319_v62 = vld [vmem:[#allocation7 + $0x48] sm:$0xff]  ;;  %v336_v63 = vld [vmem:[#allocation7 + $0xd0] sm:$0xff] }
  0x95   : > { %v337_v0 = vld [vmem:[#allocation7 + $0xd8] sm:$0xff]  ;;  %v288_v1 = vld [vmem:[#allocation5 + $0x50] sm:$0xff]  ;;  %v1397_v3 = vpack.c.bf16 %v319_v62, %v318_v61  ;;  %v306_v4 = vld [vmem:[#allocation5 + $0xe0] sm:$0xff] }
  0x96   : > { %1386 = vmatpush3.bf16.xpose.msra.mxu1 %v1385_v30  ;;  %v289_v2 = vld [vmem:[#allocation5 + $0x58] sm:$0xff]  ;;  %v307_v5 = vld [vmem:[#allocation5 + $0xe8] sm:$0xff]  ;;  %v1399_v6 = vpack.c.bf16 %v337_v0, %v336_v63  ;;  %v320_v9 = vld [vmem:[#allocation7 + $0x50] sm:$0xff] }
  0x97   : > { %1388 = vmatprep.subr.bf16.mxu1 %v1387_v33  ;;  %v1369_v7 = vpack.c.bf16 %v289_v2, %v288_v1  ;;  %v1371_v8 = vpack.c.bf16 %v307_v5, %v306_v4  ;;  %v321_v10 = vld [vmem:[#allocation7 + $0x58] sm:$0xff]  ;;  %v338_v11 = vld [vmem:[#allocation7 + $0xe0] sm:$0xff]  ;;  %v339_v12 = vld [vmem:[#allocation7 + $0xe8] sm:$0xff] }
  0x98   : > { %v290_v13 = vld [vmem:[#allocation5 + $0x60] sm:$0xff]  ;;  %v291_v14 = vld [vmem:[#allocation5 + $0x68] sm:$0xff]  ;;  %v1401_v15 = vpack.c.bf16 %v321_v10, %v320_v9  ;;  %v308_v16 = vld [vmem:[#allocation5 + $0xf0] sm:$0xff]  ;;  %v1403_v18 = vpack.c.bf16 %v339_v12, %v338_v11 }
  0x99   : > { %v309_v17 = vld [vmem:[#allocation5 + $0xf8] sm:$0xff]  ;;  %v1373_v19 = vpack.c.bf16 %v291_v14, %v290_v13  ;;  %v322_v21 = vld [vmem:[#allocation7 + $0x60] sm:$0xff]  ;;  %v323_v22 = vld [vmem:[#allocation7 + $0x68] sm:$0xff] }
  0x9a   : > { %1358 = vmatpush3.bf16.xpose.msra.mxu0 %v1357_v34  ;;  %v1375_v20 = vpack.c.bf16 %v309_v17, %v308_v16  ;;  %v340_v23 = vld [vmem:[#allocation7 + $0xf0] sm:$0xff]  ;;  %v341_v24 = vld [vmem:[#allocation7 + $0xf8] sm:$0xff]  ;;  %v1405_v27 = vpack.c.bf16 %v323_v22, %v322_v21  ;;  %v343_v29 = vld [vmem:[#allocation8 + $0x8] sm:$0xff] }
  0x9b   : > { %1360 = vmatprep.subr.bf16.mxu0 %v1359_v35  ;;  %v292_v25 = vld [vmem:[#allocation5 + $0x70] sm:$0xff]  ;;  %v293_v26 = vld [vmem:[#allocation5 + $0x78] sm:$0xff]  ;;  %v1407_v28 = vpack.c.bf16 %v341_v24, %v340_v23  ;;  %v342_v37 = vld [vmem:[#allocation8] sm:$0xff] }
  0x9c   : > { %v345_v30 = vld [vmem:[#allocation8 + $0x18] sm:$0xff]  ;;  %v1377_v31 = vpack.c.bf16 %v293_v26, %v292_v25  ;;  %v324_v33 = vld [vmem:[#allocation7 + $0x70] sm:$0xff]  ;;  %v347_v39 = vld [vmem:[#allocation8 + $0x28] sm:$0xff] }
  0x9d   : > { %v1411_v32 = vpack.c.bf16 %v345_v30, %v343_v29  ;;  %v325_v34 = vld [vmem:[#allocation7 + $0x78] sm:$0xff]  ;;  %v344_v38 = vld [vmem:[#allocation8 + $0x10] sm:$0xff]  ;;  %v263_v42 = vld [vmem:[%s2104_s10 + $0x8] sm:$0xff] }
  0x9e   : > { %1390 = vmatpush3.bf16.xpose.msra.mxu1 %v1389_v43  ;;  %v1409_v35 = vpack.c.bf16 %v325_v34, %v324_v33  ;;  %v349_v40 = vld [vmem:[#allocation8 + $0x38] sm:$0xff]  ;;  %v1413_v41 = vpack.c.bf16 %v344_v38, %v342_v37  ;;  %v264_v44 = vld [vmem:[%s2104_s10 + $0x10] sm:$0xff]  ;;  %v346_v45 = vld [vmem:[#allocation8 + $0x20] sm:$0xff] }
  0x9f   : > { %1392 = vmatprep.subr.bf16.mxu1 %v1391_v46  ;;  %v1415_v43 = vpack.c.bf16 %v349_v40, %v347_v39  ;;  %v348_v46 = vld [vmem:[#allocation8 + $0x30] sm:$0xff]  ;;  %v265_v49 = vld [vmem:[%s2104_s10 + $0x18] sm:$0xff]  ;;  %v266_v52 = vld [vmem:[%s2104_s10 + $0x20] sm:$0xff] }
  0xa0   : > { %v1417_v50 = vpack.c.bf16 %v348_v46, %v346_v45  ;;  %v350_v53 = vld [vmem:[#allocation8 + $0x40] sm:$0xff]  ;;  %v352_v54 = vld [vmem:[#allocation8 + $0x50] sm:$0xff]  ;;  %v267_v56 = vld [vmem:[%s2104_s10 + $0x28] sm:$0xff] }
  0xa1   : > { %v1421_v57 = vpack.c.bf16 %v352_v54, %v350_v53  ;;  %v356_v61 = vld [vmem:[#allocation8 + $0x70] sm:$0xff]  ;;  %v269_v62 = vld [vmem:[%s2104_s10 + $0x38] sm:$0xff]  ;;  %v270_v0 = vld [vmem:[%s2104_s10 + $0x40] sm:$0xff] }
  0xa2   : > { %1362 = vmatpush3.bf16.xpose.msra.mxu0 %v1361_v47  ;;  %v351_v47 = vld [vmem:[#allocation8 + $0x48] sm:$0xff]  ;;  %v272_v2 = vld [vmem:[%s2104_s10 + $0x50] sm:$0xff]  ;;  %v274_v4 = vld [vmem:[%s2104_s10 + $0x60] sm:$0xff] }
  0xa3   : > { %1364 = vmatprep.subr.bf16.mxu0 %v1363_v48  ;;  %v353_v48 = vld [vmem:[#allocation8 + $0x58] sm:$0xff]  ;;  %v271_v1 = vld [vmem:[%s2104_s10 + $0x48] sm:$0xff]  ;;  %v358_v11 = vld [vmem:[#allocation8 + $0x80] sm:$0xff] }
  0xa4   : > { %v1419_v51 = vpack.c.bf16 %v353_v48, %v351_v47  ;;  %v275_v5 = vld [vmem:[%s2104_s10 + $0x68] sm:$0xff]  ;;  %v361_v9 = vld [vmem:[#allocation8 + $0x98] sm:$0xff]  ;;  %v360_v12 = vld [vmem:[#allocation8 + $0x90] sm:$0xff] }
  0xa5   : > { %v1429_v13 = vpack.c.bf16 %v360_v12, %v358_v11  ;;  %v363_v14 = vld [vmem:[#allocation8 + $0xa8] sm:$0xff]  ;;  %v362_v17 = vld [vmem:[#allocation8 + $0xa0] sm:$0xff]  ;;  %v369_v21 = vld [vmem:[#allocation8 + $0xd8] sm:$0xff] }
  0xa6   : > { %1394 = vmatpush3.bf16.xpose.msra.mxu1 %v1393_v55  ;;  %v355_v55 = vld [vmem:[#allocation8 + $0x68] sm:$0xff]  ;;  %v366_v23 = vld [vmem:[#allocation8 + $0xc0] sm:$0xff]  ;;  %v368_v24 = vld [vmem:[#allocation8 + $0xd0] sm:$0xff] }
  0xa7   : > { %1396 = vmatprep.subr.bf16.mxu1 %v1395_v58  ;;  %v1437_v25 = vpack.c.bf16 %v368_v24, %v366_v23  ;;  %v371_v26 = vld [vmem:[#allocation8 + $0xe8] sm:$0xff]  ;;  %v370_v29 = vld [vmem:[#allocation8 + $0xe0] sm:$0xff]  ;;  %v372_v30 = vld [vmem:[#allocation8 + $0xf0] sm:$0xff] }
  0xaa   : > { %1366 = vmatpush3.bf16.xpose.msra.mxu0 %v1365_v59  ;;  %v268_v59 = vld [vmem:[%s2104_s10 + $0x30] sm:$0xff] }
  0xab   : > { %1368 = vmatprep.subr.bf16.mxu0 %v1367_v60  ;;  %v354_v60 = vld [vmem:[#allocation8 + $0x60] sm:$0xff] }
  0xac   : > { %v1425_v63 = vpack.c.bf16 %v356_v61, %v354_v60 }
  0xae   : > { %1398 = vmatpush3.bf16.xpose.msra.mxu1 %v1397_v3  ;;  %v273_v3 = vld [vmem:[%s2104_s10 + $0x58] sm:$0xff] }
  0xaf   : > { %1400 = vmatprep.subr.bf16.mxu1 %v1399_v6  ;;  %v276_v6 = vld [vmem:[%s2104_s10 + $0x70] sm:$0xff] }
  0xb2   : > { %1370 = vmatpush3.bf16.xpose.msra.mxu0 %v1369_v7  ;;  %v277_v7 = vld [vmem:[%s2104_s10 + $0x78] sm:$0xff] }
  0xb3   : > { %1372 = vmatprep.subr.bf16.mxu0 %v1371_v8  ;;  %v359_v8 = vld [vmem:[#allocation8 + $0x88] sm:$0xff] }
  0xb4   : > { %v1427_v10 = vpack.c.bf16 %v361_v9, %v359_v8 }
  0xb6   : > { %1402 = vmatpush3.bf16.xpose.msra.mxu1 %v1401_v15  ;;  %v365_v15 = vld [vmem:[#allocation8 + $0xb8] sm:$0xff] }
  0xb7   : > { %1404 = vmatprep.subr.bf16.mxu1 %v1403_v18  ;;  %v1431_v16 = vpack.c.bf16 %v365_v15, %v363_v14  ;;  %v364_v18 = vld [vmem:[#allocation8 + $0xb0] sm:$0xff] }
  0xba   : > { %1374 = vmatpush3.bf16.xpose.msra.mxu0 %v1373_v19  ;;  %v1433_v19 = vpack.c.bf16 %v364_v18, %v362_v17 }
  0xbb   : > { %1376 = vmatprep.subr.bf16.mxu0 %v1375_v20  ;;  %v367_v20 = vld [vmem:[#allocation8 + $0xc8] sm:$0xff] }
  0xbc   : > { %v1435_v22 = vpack.c.bf16 %v369_v21, %v367_v20 }
  0xbe   : > { %1406 = vmatpush3.bf16.xpose.msra.mxu1 %v1405_v27  ;;  %v373_v27 = vld [vmem:[#allocation8 + $0xf8] sm:$0xff] }
  0xbf   : > { %1408 = vmatprep.subr.bf16.mxu1 %v1407_v28  ;;  %v1439_v28 = vpack.c.bf16 %v373_v27, %v371_v26 }
  0xc2   : > { %1378 = vmatpush3.bf16.xpose.msra.mxu0 %v1377_v31  ;;  %v1441_v31 = vpack.c.bf16 %v372_v30, %v370_v29 }
  0xc3   : > { %1412 = vmatprep.subr.bf16.mxu0 %v1411_v32 }
  0xc6   : > { %1410 = vmatpush3.bf16.xpose.msra.mxu1 %v1409_v35 }
  0xc7   : > { %1443 = vmatprep.subr.bf16.mxu1 %v1411_v32 }
  0xc9   : > { %1252 = vmatmul.mubr.f32.vlgmr.msra.gmra.mrb[0].mxu0 %v2119_v36 }
  0xca   : > { %1253 = vmatprep.mubr.f32.mxu0 %v263_v42  ;;  %1414 = vmatpush1.bf16.xpose.msra.mxu0 %v1413_v41 }
  0xcb   : > { %1416 = vmatprep.subr.bf16.mxu0 %v1415_v43 }
  0xcd   : > { %1254 = vmatmul.mubr.f32.gmra.mrb[2].mxu0 %v263_v42  ;;  %1316 = vmatmul.mubr.f32.vlgmr.msra.gmra.mrb[0].mxu1 %v2119_v36  ;;  %v357_v36 = vld [vmem:[#allocation8 + $0x78] sm:$0xff] }
  0xce   : > { %1255 = vmatprep.mubr.f32.mxu0 %v264_v44  ;;  %1317 = vmatprep.mubr.f32.mxu1 %v263_v42  ;;  %v1423_v58 = vpack.c.bf16 %v357_v36, %v355_v55 }
  0xcf   : > { %1451 = vmatpush1.bf16.xpose.msra.mxu1 %v1413_v41 }
  0xd0   : > { %1444 = vmatprep.subr.bf16.mxu1 %v1415_v43 }
  0xd1   : > { %1256 = vmatmul.mubr.f32.gmra.mrb[4].mxu0 %v264_v44  ;;  %1318 = vmatmul.mubr.f32.gmra.mrb[2].mxu1 %v263_v42 }
  0xd2   : > { %1257 = vmatprep.mubr.f32.mxu0 %v265_v49  ;;  %1319 = vmatprep.mubr.f32.mxu1 %v264_v44 }
  0xd3   : > { %1418 = vmatpush1.bf16.xpose.msra.mxu0 %v1417_v50 }
  0xd4   : > { %1420 = vmatprep.subr.bf16.mxu0 %v1419_v51 }
  0xd5   : > { %1258 = vmatmul.mubr.f32.gmra.mrb[6].mxu0 %v265_v49  ;;  %1320 = vmatmul.mubr.f32.gmra.mrb[4].mxu1 %v264_v44 }
  0xd6   : > { %1259 = vmatprep.mubr.f32.mxu0 %v266_v52  ;;  %1321 = vmatprep.mubr.f32.mxu1 %v265_v49 }
  0xd7   : > { %1452 = vmatpush1.bf16.xpose.msra.mxu1 %v1417_v50 }
  0xd8   : > { %1445 = vmatprep.subr.bf16.mxu1 %v1419_v51 }
  0xd9   : > { %1260 = vmatmul.mubr.f32.gmra.mrb[8].mxu0 %v266_v52  ;;  %1322 = vmatmul.mubr.f32.gmra.mrb[6].mxu1 %v265_v49 }
  0xda   : > { %1261 = vmatprep.mubr.f32.mxu0 %v267_v56  ;;  %1323 = vmatprep.mubr.f32.mxu1 %v266_v52 }
  0xdb   : > { %1422 = vmatpush1.bf16.xpose.msra.mxu0 %v1421_v57 }
  0xdc   : > { %1424 = vmatprep.subr.bf16.mxu0 %v1423_v58 }
  0xdd   : > { %1262 = vmatmul.mubr.f32.gmra.mrb[10].mxu0 %v267_v56  ;;  %1324 = vmatmul.mubr.f32.gmra.mrb[8].mxu1 %v266_v52 }
  0xde   : > { %1263 = vmatprep.mubr.f32.mxu0 %v268_v59  ;;  %1325 = vmatprep.mubr.f32.mxu1 %v267_v56 }
  0xdf   : > { %1453 = vmatpush1.bf16.xpose.msra.mxu1 %v1421_v57 }
  0xe0   : > { %1446 = vmatprep.subr.bf16.mxu1 %v1423_v58 }
  0xe1   : > { %1264 = vmatmul.mubr.f32.gmra.mrb[12].mxu0 %v268_v59  ;;  %1326 = vmatmul.mubr.f32.gmra.mrb[10].mxu1 %v267_v56 }
  0xe2   : > { %1265 = vmatprep.mubr.f32.mxu0 %v269_v62  ;;  %1327 = vmatprep.mubr.f32.mxu1 %v268_v59 }
  0xe3   : > { %1426 = vmatpush1.bf16.xpose.msra.mxu0 %v1425_v63 }
  0xe4   : > { %1428 = vmatprep.subr.bf16.mxu0 %v1427_v10 }
  0xe5   : > { %1266 = vmatmul.mubr.f32.gmra.mrb[14].mxu0 %v269_v62  ;;  %1328 = vmatmul.mubr.f32.gmra.mrb[12].mxu1 %v268_v59 }
  0xe6   : > { %1267 = vmatprep.mubr.f32.mxu0 %v270_v0  ;;  %1329 = vmatprep.mubr.f32.mxu1 %v269_v62 }
  0xe7   : > { %1454 = vmatpush1.bf16.xpose.msra.mxu1 %v1425_v63 }
  0xe8   : > { %1447 = vmatprep.subr.bf16.mxu1 %v1427_v10 }
  0xe9   : > { %1268 = vmatmul.mubr.f32.gmra.mrb[16].mxu0 %v270_v0  ;;  %1330 = vmatmul.mubr.f32.gmra.mrb[14].mxu1 %v269_v62 }
  0xea   : > { %1269 = vmatprep.mubr.f32.mxu0 %v271_v1  ;;  %1331 = vmatprep.mubr.f32.mxu1 %v270_v0 }
  0xeb   : > { %1430 = vmatpush1.bf16.xpose.msra.mxu0 %v1429_v13 }
  0xec   : > { %1432 = vmatprep.subr.bf16.mxu0 %v1431_v16 }
  0xed   : > { %1270 = vmatmul.mubr.f32.gmra.mrb[18].mxu0 %v271_v1  ;;  %1332 = vmatmul.mubr.f32.gmra.mrb[16].mxu1 %v270_v0 }
  0xee   : > { %1271 = vmatprep.mubr.f32.mxu0 %v272_v2  ;;  %1333 = vmatprep.mubr.f32.mxu1 %v271_v1 }
  0xef   : > { %1455 = vmatpush1.bf16.xpose.msra.mxu1 %v1429_v13 }
  0xf0   : > { %1448 = vmatprep.subr.bf16.mxu1 %v1431_v16 }
  0xf1   : > { %1272 = vmatmul.mubr.f32.gmra.mrb[20].mxu0 %v272_v2  ;;  %1334 = vmatmul.mubr.f32.gmra.mrb[18].mxu1 %v271_v1 }
  0xf2   : > { %1273 = vmatprep.mubr.f32.mxu0 %v273_v3  ;;  %1335 = vmatprep.mubr.f32.mxu1 %v272_v2 }
  0xf3   : > { %1434 = vmatpush1.bf16.xpose.msra.mxu0 %v1433_v19 }
  0xf4   : > { %1436 = vmatprep.subr.bf16.mxu0 %v1435_v22 }
  0xf5   : > { %1274 = vmatmul.mubr.f32.gmra.mrb[22].mxu0 %v273_v3  ;;  %1336 = vmatmul.mubr.f32.gmra.mrb[20].mxu1 %v272_v2 }
  0xf6   : > { %1275 = vmatprep.mubr.f32.mxu0 %v274_v4  ;;  %1337 = vmatprep.mubr.f32.mxu1 %v273_v3 }
  0xf7   : > { %1456 = vmatpush1.bf16.xpose.msra.mxu1 %v1433_v19 }
  0xf8   : > { %1449 = vmatprep.subr.bf16.mxu1 %v1435_v22 }
  0xf9   : > { %1276 = vmatmul.mubr.f32.gmra.mrb[24].mxu0 %v274_v4  ;;  %1338 = vmatmul.mubr.f32.gmra.mrb[22].mxu1 %v273_v3 }
  0xfa   : > { %1277 = vmatprep.mubr.f32.mxu0 %v275_v5  ;;  %1339 = vmatprep.mubr.f32.mxu1 %v274_v4 }
  0xfb   : > { %1438 = vmatpush1.bf16.xpose.msra.mxu0 %v1437_v25 }
  0xfc   : > { %1440 = vmatprep.subr.bf16.mxu0 %v1439_v28 }
  0xfd   : > { %1278 = vmatmul.mubr.f32.gmra.mrb[26].mxu0 %v275_v5  ;;  %1340 = vmatmul.mubr.f32.gmra.mrb[24].mxu1 %v274_v4 }
  0xfe   : > { %1279 = vmatprep.mubr.f32.mxu0 %v276_v6  ;;  %1341 = vmatprep.mubr.f32.mxu1 %v275_v5 }
  0xff   : > { %1457 = vmatpush1.bf16.xpose.msra.mxu1 %v1437_v25 }
 0x100   : > { %1450 = vmatprep.subr.bf16.mxu1 %v1439_v28 }
 0x101   : > { %1280 = vmatmul.mubr.f32.gmra.mrb[28].mxu0 %v276_v6  ;;  %1342 = vmatmul.mubr.f32.gmra.mrb[26].mxu1 %v275_v5 }
 0x102   : > { %1281 = vmatprep.mubr.f32.mxu0 %v277_v7  ;;  %1343 = vmatprep.mubr.f32.mxu1 %v276_v6 }
 0x103   : > { %1442 = vmatpush1.bf16.xpose.msra.mxu0 %v1441_v31 }
 0x105   : > { %1282 = vmatmul.mubr.f32.gmra.mrb[30].mxu0 %v277_v7  ;;  %1344 = vmatmul.mubr.f32.gmra.mrb[28].mxu1 %v276_v6 }
 0x106   : > { %1345 = vmatprep.mubr.f32.mxu1 %v277_v7 }
 0x107   : > { %1458 = vmatpush1.bf16.xpose.msra.mxu1 %v1441_v31 }
 0x109   : > { %1346 = vmatmul.mubr.f32.gmra.mrb[30].mxu1 %v277_v7 }
 0x19c   : > { %v2140_v32 = vpop.f32.mrb[0].mxu0 }
 0x19d   : > { %v696_v33 = vsub.f32 0.0, %v2140_v32  ;;  %v2143_v34 = vpop.f32.mrb[1].mxu0 }
 0x19e   : > { %v697_v35 = vsub.f32 0.0, %v2143_v34 }
 0x19f   : > { %v728_v37 = vmul.f32 1.442695, %v696_v33 }
 0x1a0   : > { %v730_v38 = vmul.f32 1.442695, %v697_v35  ;;  %v2146_v39 = vpop.f32.mrb[2].mxu0  ;;  %v2151_v42 = vpop.f32.mrb[0].mxu1 }
 0x1a1   : > { %1542 = vpow2.f32 %v728_v37  ;;  %v698_v40 = vsub.f32 0.0, %v2146_v39  ;;  %v2149_v41 = vpop.f32.mrb[3].mxu0  ;;  %v2154_v44 = vpop.f32.mrb[1].mxu1 }
 0x1a2   : > { %1544 = vpow2.f32 %v730_v38  ;;  %v699_v43 = vsub.f32 0.0, %v2149_v41 }
 0x1a3   : > { %v732_v45 = vmul.f32 1.442695, %v698_v40 }
 0x1a4   : > { %v734_v46 = vmul.f32 1.442695, %v699_v43  ;;  %v2156_v47 = vpop.f32.mrb[4].mxu0  ;;  %v2161_v50 = vpop.f32.mrb[2].mxu1 }
 0x1a5   : > { %1546 = vpow2.f32 %v732_v45  ;;  %v700_v48 = vsub.f32 0.0, %v2156_v47  ;;  %v2159_v49 = vpop.f32.mrb[5].mxu0  ;;  %v2164_v52 = vpop.f32.mrb[3].mxu1 }
 0x1a6   : > { %1548 = vpow2.f32 %v734_v46  ;;  %v701_v51 = vsub.f32 0.0, %v2159_v49 }
 0x1a7   : > { %v736_v53 = vmul.f32 1.442695, %v700_v48 }
 0x1a8   : > { %v738_v54 = vmul.f32 1.442695, %v701_v51  ;;  %v2166_v55 = vpop.f32.mrb[6].mxu0  ;;  %v2171_v57 = vpop.f32.mrb[4].mxu1 }
 0x1a9   : > { %1550 = vpow2.f32 %v736_v53  ;;  %v702_v36 = vsub.f32 0.0, %v2166_v55  ;;  %v2169_v56 = vpop.f32.mrb[7].mxu0  ;;  %v2174_v59 = vpop.f32.mrb[5].mxu1 }
 0x1aa   : > { %1552 = vpow2.f32 %v738_v54  ;;  %v703_v58 = vsub.f32 0.0, %v2169_v56 }
 0x1ab   : > { %v1543_v60 = vpop.eup %1542  ;;  %v740_v61 = vmul.f32 1.442695, %v702_v36 }
 0x1ac   : > { %v1545_v62 = vpop.eup %1544  ;;  %v792_v63 = vadd.f32 1.0, %v1543_v60  ;;  %v742_v0 = vmul.f32 1.442695, %v703_v58  ;;  %v2176_v1 = vpop.f32.mrb[8].mxu0 }
 0x1ad   : > { %v793_v2 = vadd.f32 1.0, %v1545_v62  ;;  %1554 = vpow2.f32 %v740_v61  ;;  %v704_v3 = vsub.f32 0.0, %v2176_v1  ;;  %v2179_v4 = vpop.f32.mrb[9].mxu0  ;;  %v2181_v5 = vpop.f32.mrb[6].mxu1 }
 0x1ae   : > { %1556 = vrcp.f32 %v792_v63  ;;  %v705_v6 = vsub.f32 0.0, %v2179_v4  ;;  %v2184_v7 = vpop.f32.mrb[7].mxu1 }
 0x1af   : > { %v1547_v8 = vpop.eup %1546  ;;  %1558 = vrcp.f32 %v793_v2  ;;  %v744_v9 = vmul.f32 1.442695, %v704_v3 }
 0x1b0   : > { %v1549_v10 = vpop.eup %1548  ;;  %v794_v11 = vadd.f32 1.0, %v1547_v8  ;;  %1560 = vpow2.f32 %v742_v0  ;;  %v746_v12 = vmul.f32 1.442695, %v705_v6  ;;  %v2186_v13 = vpop.f32.mrb[10].mxu0 }
 0x1b1   : > { %v795_v14 = vadd.f32 1.0, %v1549_v10  ;;  %1562 = vpow2.f32 %v744_v9  ;;  %v706_v15 = vsub.f32 0.0, %v2186_v13  ;;  %v2189_v16 = vpop.f32.mrb[11].mxu0  ;;  %v2191_v17 = vpop.f32.mrb[8].mxu1 }
 0x1b2   : > { %1564 = vrcp.f32 %v794_v11  ;;  %v707_v18 = vsub.f32 0.0, %v2189_v16  ;;  %v2194_v19 = vpop.f32.mrb[9].mxu1 }
 0x1b3   : > { %v1551_v20 = vpop.eup %1550  ;;  %1566 = vrcp.f32 %v795_v14  ;;  %v748_v21 = vmul.f32 1.442695, %v706_v15 }
 0x1b4   : > { %v1553_v22 = vpop.eup %1552  ;;  %v796_v23 = vadd.f32 1.0, %v1551_v20  ;;  %1568 = vpow2.f32 %v746_v12  ;;  %v750_v24 = vmul.f32 1.442695, %v707_v18  ;;  %v2196_v25 = vpop.f32.mrb[12].mxu0 }
 0x1b5   : > { %v797_v26 = vadd.f32 1.0, %v1553_v22  ;;  %1570 = vpow2.f32 %v748_v21  ;;  %v708_v27 = vsub.f32 0.0, %v2196_v25  ;;  %v2199_v28 = vpop.f32.mrb[13].mxu0  ;;  %v2201_v29 = vpop.f32.mrb[10].mxu1 }
 0x1b6   : > { %1572 = vrcp.f32 %v796_v23  ;;  %v709_v30 = vsub.f32 0.0, %v2199_v28  ;;  %v2204_v31 = vpop.f32.mrb[11].mxu1 }
 0x1b7   : > { %v1555_v33 = vpop.eup %1554  ;;  %1574 = vrcp.f32 %v797_v26  ;;  %v752_v35 = vmul.f32 1.442695, %v708_v27 }
 0x1b8   : > { %v1557_v37 = vpop.eup %1556  ;;  %v798_v38 = vadd.f32 1.0, %v1555_v33  ;;  %1576 = vpow2.f32 %v750_v24  ;;  %v754_v40 = vmul.f32 1.442695, %v709_v30  ;;  %v2206_v43 = vpop.f32.mrb[14].mxu0 }
 0x1b9   : > { %v1559_v45 = vpop.eup %1558  ;;  %v856_v46 = vmul.f32 %v1557_v37, %v2140_v32  ;;  %1578 = vpow2.f32 %v752_v35  ;;  %v710_v48 = vsub.f32 0.0, %v2206_v43  ;;  %v2210_v51 = vpop.f32.mrb[15].mxu0 }
 0x1ba   : > { %v2212_v53 = vpop.f32.mrb[12].mxu1  ;;  %v1561_v54 = vpop.eup %1560  ;;  %v857_v36 = vmul.f32 %v1559_v45, %v2143_v34  ;;  %1580 = vrcp.f32 %v798_v38  ;;  %v711_v58 = vsub.f32 0.0, %v2210_v51 }
 0x1bb   : > { %v2216_v60 = vpop.f32.mrb[13].mxu1  ;;  %v1563_v61 = vpop.eup %1562  ;;  %v799_v62 = vadd.f32 1.0, %v1561_v54  ;;  %1582 = vpow2.f32 %v754_v40  ;;  %v756_v63 = vmul.f32 1.442695, %v710_v48  ;;  %v888_v32 = vmul.f32 %v856_v46, %v2151_v42 }
 0x1bc   : > { %v1565_v0 = vpop.eup %1564  ;;  %v800_v2 = vadd.f32 1.0, %v1563_v61  ;;  %v758_v3 = vmul.f32 1.442695, %v711_v58  ;;  %v889_v6 = vmul.f32 %v857_v36, %v2154_v44  ;;  %v2220_v8 = vpop.f32.mrb[16].mxu0 }
 0x1bd   : > { %v1567_v9 = vpop.eup %1566  ;;  %v858_v34 = vmul.f32 %v1565_v0, %v2146_v39  ;;  %1584 = vrcp.f32 %v799_v62  ;;  %v712_v10 = vsub.f32 0.0, %v2220_v8  ;;  %v2224_v11 = vpop.f32.mrb[17].mxu0 }
 0x1be   : > { %v2226_v12 = vpop.f32.mrb[14].mxu1  ;;  %v1569_v14 = vpop.eup %1568  ;;  %v859_v42 = vmul.f32 %v1567_v9, %v2149_v41  ;;  %1586 = vrcp.f32 %v800_v2  ;;  %v713_v15 = vsub.f32 0.0, %v2224_v11  ;;  %984 = vmatprep.mubr.f32.mxu0 %v889_v6 }
 0x1bf   : > { %v2230_v44 = vpop.f32.mrb[15].mxu1  ;;  %v1571_v18 = vpop.eup %1570  ;;  %v801_v20 = vadd.f32 1.0, %v1569_v14  ;;  %1588 = vpow2.f32 %v756_v63  ;;  %v760_v39 = vmul.f32 1.442695, %v712_v10  ;;  %v890_v21 = vmul.f32 %v858_v34, %v2161_v50  ;;  %985 = vmatmul.mubr.f32.vlgmr.msra.gmra.mrb[32].mxu0 %v888_v32 }
 0x1c0   : > { %v1573_v22 = vpop.eup %1572  ;;  %v802_v23 = vadd.f32 1.0, %v1571_v18  ;;  %1590 = vpow2.f32 %v758_v3  ;;  %v762_v24 = vmul.f32 1.442695, %v713_v15  ;;  %v891_v26 = vmul.f32 %v859_v42, %v2164_v52  ;;  %v2234_v41 = vpop.f32.mrb[18].mxu0 }
 0x1c1   : > { %v1575_v27 = vpop.eup %1574  ;;  %v860_v30 = vmul.f32 %v1573_v22, %v2156_v47  ;;  %1592 = vrcp.f32 %v801_v20  ;;  %v714_v33 = vsub.f32 0.0, %v2234_v41  ;;  %v2238_v35 = vpop.f32.mrb[19].mxu0 }
 0x1c2   : > { %v2240_v37 = vpop.f32.mrb[16].mxu1  ;;  %v1577_v50 = vpop.eup %1576  ;;  %v861_v38 = vmul.f32 %v1575_v27, %v2159_v49  ;;  %1594 = vrcp.f32 %v802_v23  ;;  %v715_v40 = vsub.f32 0.0, %v2238_v35  ;;  %989 = vmatprep.mubr.f32.mxu0 %v891_v26 }
 0x1c3   : > { %v2244_v52 = vpop.f32.mrb[17].mxu1  ;;  %v1579_v45 = vpop.eup %1578  ;;  %v803_v46 = vadd.f32 1.0, %v1577_v50  ;;  %1596 = vpow2.f32 %v760_v39  ;;  %v764_v47 = vmul.f32 1.442695, %v714_v33  ;;  %v892_v48 = vmul.f32 %v860_v30, %v2171_v57  ;;  %990 = vmatmul.mubr.f32.gmra.mrb[34].mxu0 %v890_v21 }
 0x1c4   : > { %v1581_v54 = vpop.eup %1580  ;;  %v804_v36 = vadd.f32 1.0, %v1579_v45  ;;  %1598 = vpow2.f32 %v762_v24  ;;  %v893_v58 = vmul.f32 %v861_v38, %v2174_v59  ;;  %v2248_v61 = vpop.f32.mrb[20].mxu0  ;;  %v766_v63 = vmul.f32 1.442695, %v715_v40 }
 0x1c5   : > { %v1583_v49 = vpop.eup %1582  ;;  %v862_v62 = vmul.f32 %v1581_v54, %v2166_v55  ;;  %1600 = vrcp.f32 %v803_v46  ;;  %v716_v32 = vsub.f32 0.0, %v2248_v61  ;;  %v2252_v0 = vpop.f32.mrb[21].mxu0 }
 0x1c6   : > { %v2254_v2 = vpop.f32.mrb[18].mxu1  ;;  %1602 = vrcp.f32 %v804_v36  ;;  %v805_v57 = vadd.f32 1.0, %v1583_v49  ;;  %v717_v3 = vsub.f32 0.0, %v2252_v0  ;;  %994 = vmatprep.mubr.f32.mxu0 %v893_v58 }
 0x1c7   : > { %v2257_v6 = vpop.f32.mrb[19].mxu1  ;;  %v1585_v59 = vpop.eup %1584  ;;  %1604 = vpow2.f32 %v764_v47  ;;  %v768_v9 = vmul.f32 1.442695, %v716_v32  ;;  %v894_v55 = vmul.f32 %v862_v62, %v2181_v5  ;;  %995 = vmatmul.mubr.f32.gmra.mrb[36].mxu0 %v892_v48 }
 0x1c8   : > { %v1587_v34 = vpop.eup %1586  ;;  %v863_v10 = vmul.f32 %v1585_v59, %v2169_v56  ;;  %1606 = vrcp.f32 %v805_v57  ;;  %v770_v14 = vmul.f32 1.442695, %v717_v3  ;;  %v2261_v42 = vpop.f32.mrb[22].mxu0 }
 0x1c9   : > { %v1589_v15 = vpop.eup %1588  ;;  %v864_v18 = vmul.f32 %v1587_v34, %v2176_v1  ;;  %1608 = vpow2.f32 %v766_v63  ;;  %v718_v20 = vsub.f32 0.0, %v2261_v42  ;;  %v2265_v39 = vpop.f32.mrb[23].mxu0 }
 0x1ca   : > { %v2267_v21 = vpop.f32.mrb[20].mxu1  ;;  %v1591_v22 = vpop.eup %1590  ;;  %v806_v5 = vadd.f32 1.0, %v1589_v15  ;;  %1610 = vpow2.f32 %v768_v9  ;;  %v895_v23 = vmul.f32 %v863_v10, %v2184_v7  ;;  %v719_v56 = vsub.f32 0.0, %v2265_v39 }
 0x1cb   : > { %v2271_v24 = vpop.f32.mrb[21].mxu1  ;;  %v1593_v26 = vpop.eup %1592  ;;  %v807_v27 = vadd.f32 1.0, %v1591_v22  ;;  %1612 = vpow2.f32 %v770_v14  ;;  %v772_v1 = vmul.f32 1.442695, %v718_v20  ;;  %v896_v30 = vmul.f32 %v864_v18, %v2191_v17 }
 0x1cc   : > { %v1595_v33 = vpop.eup %1594  ;;  %v865_v50 = vmul.f32 %v1593_v26, %v2179_v4  ;;  %1614 = vrcp.f32 %v806_v5  ;;  %v774_v38 = vmul.f32 1.442695, %v719_v56  ;;  %999 = vmatprep.mubr.f32.mxu0 %v895_v23  ;;  %v2275_v40 = vpop.f32.mrb[24].mxu0 }
 0x1cd   : > { %v1597_v45 = vpop.eup %1596  ;;  %v866_v7 = vmul.f32 %v1595_v33, %v2186_v13  ;;  %1616 = vrcp.f32 %v807_v27  ;;  %1000 = vmatmul.mubr.f32.gmra.mrb[38].mxu0 %v894_v55  ;;  %v720_v46 = vsub.f32 0.0, %v2275_v40  ;;  %v2279_v47 = vpop.f32.mrb[25].mxu0 }
 0x1ce   : > { %v2281_v48 = vpop.f32.mrb[22].mxu1  ;;  %v1599_v17 = vpop.eup %1598  ;;  %v808_v54 = vadd.f32 1.0, %v1597_v45  ;;  %1618 = vpow2.f32 %v772_v1  ;;  %v897_v4 = vmul.f32 %v865_v50, %v2194_v19  ;;  %v721_v36 = vsub.f32 0.0, %v2279_v47 }
 0x1cf   : > { %v2285_v58 = vpop.f32.mrb[23].mxu1  ;;  %v1601_v49 = vpop.eup %1600  ;;  %v809_v62 = vadd.f32 1.0, %v1599_v17  ;;  %1620 = vpow2.f32 %v774_v38  ;;  %v776_v13 = vmul.f32 1.442695, %v720_v46  ;;  %v898_v63 = vmul.f32 %v866_v7, %v2201_v29 }
 0x1d0   : > { %v1603_v32 = vpop.eup %1602  ;;  %v867_v57 = vmul.f32 %v1601_v49, %v2189_v16  ;;  %1622 = vrcp.f32 %v808_v54  ;;  %v778_v3 = vmul.f32 1.442695, %v721_v36  ;;  %1004 = vmatprep.mubr.f32.mxu0 %v897_v4  ;;  %v2289_v59 = vpop.f32.mrb[26].mxu0 }
 0x1d1   : > { %v1605_v9 = vpop.eup %1604  ;;  %v868_v19 = vmul.f32 %v1603_v32, %v2196_v25  ;;  %1624 = vrcp.f32 %v809_v62  ;;  %1005 = vmatmul.mubr.f32.gmra.mrb[40].mxu0 %v896_v30  ;;  %v722_v55 = vsub.f32 0.0, %v2289_v59  ;;  %v2293_v34 = vpop.f32.mrb[27].mxu0 }
 0x1d2   : > { %v2295_v10 = vpop.f32.mrb[24].mxu1  ;;  %v1607_v29 = vpop.eup %1606  ;;  %v810_v14 = vadd.f32 1.0, %v1605_v9  ;;  %1626 = vpow2.f32 %v776_v13  ;;  %v899_v16 = vmul.f32 %v867_v57, %v2204_v31  ;;  %v723_v15 = vsub.f32 0.0, %v2293_v34 }
 0x1d3   : > { %v2299_v18 = vpop.f32.mrb[25].mxu1  ;;  %v1609_v20 = vpop.eup %1608  ;;  %v869_v25 = vmul.f32 %v1607_v29, %v2199_v28  ;;  %1628 = vpow2.f32 %v778_v3  ;;  %v780_v22 = vmul.f32 1.442695, %v722_v55  ;;  %v900_v5 = vmul.f32 %v868_v19, %v2212_v53 }
 0x1d4   : > { %v1611_v23 = vpop.eup %1610  ;;  %1630 = vrcp.f32 %v810_v14  ;;  %v811_v56 = vadd.f32 1.0, %v1609_v20  ;;  %v782_v26 = vmul.f32 1.442695, %v723_v15  ;;  %1009 = vmatprep.mubr.f32.mxu0 %v899_v16  ;;  %v2303_v27 = vpop.f32.mrb[28].mxu0 }
 0x1d5   : > { %v1613_v1 = vpop.eup %1612  ;;  %v812_v31 = vadd.f32 1.0, %v1611_v23  ;;  %1632 = vpow2.f32 %v780_v22  ;;  %v901_v30 = vmul.f32 %v869_v25, %v2216_v60  ;;  %1010 = vmatmul.mubr.f32.gmra.mrb[42].mxu0 %v898_v63  ;;  %v724_v33 = vsub.f32 0.0, %v2303_v27  ;;  %v2307_v28 = vpop.f32.mrb[29].mxu0 }
 0x1d6   : > { %v2309_v50 = vpop.f32.mrb[26].mxu1  ;;  %v1615_v53 = vpop.eup %1614  ;;  %1634 = vrcp.f32 %v811_v56  ;;  %v813_v38 = vadd.f32 1.0, %v1613_v1  ;;  %v725_v45 = vsub.f32 0.0, %v2307_v28 }
 0x1d7   : > { %v2312_v7 = vpop.f32.mrb[27].mxu1  ;;  %v1617_v46 = vpop.eup %1616  ;;  %v870_v17 = vmul.f32 %v1615_v53, %v2206_v43  ;;  %1636 = vrcp.f32 %v812_v31  ;;  %v784_v54 = vmul.f32 1.442695, %v724_v33  ;;  %1014 = vmatprep.mubr.f32.mxu0 %v901_v30 }
 0x1d8   : > { %v1619_v60 = vpop.eup %1618  ;;  %v871_v4 = vmul.f32 %v1617_v46, %v2210_v51  ;;  %1638 = vrcp.f32 %v813_v38  ;;  %v786_v36 = vmul.f32 1.442695, %v725_v45  ;;  %v2316_v49 = vpop.f32.mrb[30].mxu0 }
 0x1d9   : > { %v1621_v62 = vpop.eup %1620  ;;  %v814_v13 = vadd.f32 1.0, %v1619_v60  ;;  %1640 = vpow2.f32 %v782_v26  ;;  %v902_v63 = vmul.f32 %v870_v17, %v2226_v12  ;;  %1015 = vmatmul.mubr.f32.gmra.mrb[44].mxu0 %v900_v5  ;;  %v726_v32 = vsub.f32 0.0, %v2316_v49  ;;  %v2320_v57 = vpop.f32.mrb[31].mxu0 }
 0x1da   : > { %v2322_v43 = vpop.f32.mrb[28].mxu1  ;;  %v1623_v3 = vpop.eup %1622  ;;  %v815_v9 = vadd.f32 1.0, %v1621_v62  ;;  %1642 = vpow2.f32 %v784_v54  ;;  %v903_v51 = vmul.f32 %v871_v4, %v2230_v44  ;;  %v727_v19 = vsub.f32 0.0, %v2320_v57 }
 0x1db   : > { %v2326_v55 = vpop.f32.mrb[29].mxu1  ;;  %v1625_v29 = vpop.eup %1624  ;;  %v872_v14 = vmul.f32 %v1623_v3, %v2220_v8  ;;  %1644 = vrcp.f32 %v814_v13  ;;  %v788_v12 = vmul.f32 1.442695, %v726_v32 }
 0x1dc   : > { %v1627_v16 = vpop.eup %1626  ;;  %v873_v15 = vmul.f32 %v1625_v29, %v2224_v11  ;;  %1646 = vrcp.f32 %v815_v9  ;;  %1019 = vmatprep.mubr.f32.mxu0 %v903_v51  ;;  %v790_v22 = vmul.f32 1.442695, %v727_v19  ;;  %v2331_v5 = vpop.f32.mrb[30].mxu1 }
 0x1dd   : > { %v1629_v20 = vpop.eup %1628  ;;  %v816_v25 = vadd.f32 1.0, %v1627_v16  ;;  %1648 = vpow2.f32 %v786_v36  ;;  %v904_v44 = vmul.f32 %v872_v14, %v2240_v37  ;;  %1020 = vmatmul.mubr.f32.gmra.mrb[46].mxu0 %v902_v63  ;;  %v2334_v26 = vpop.f32.mrb[31].mxu1 }
 0x1de   : > { %v1631_v23 = vpop.eup %1630  ;;  %v817_v56 = vadd.f32 1.0, %v1629_v20  ;;  %1650 = vpow2.f32 %v788_v12  ;;  %v905_v8 = vmul.f32 %v873_v15, %v2244_v52 }
 0x1df   : > { %v1633_v1 = vpop.eup %1632  ;;  %v874_v11 = vmul.f32 %v1631_v23, %v2234_v41  ;;  %1652 = vrcp.f32 %v816_v25 }
 0x1e0   : > { %v1635_v31 = vpop.eup %1634  ;;  %1654 = vrcp.f32 %v817_v56  ;;  %v818_v30 = vadd.f32 1.0, %v1633_v1  ;;  %1024 = vmatprep.mubr.f32.mxu1 %v905_v8 }
 0x1e1   : > { %v1637_v33 = vpop.eup %1636  ;;  %v875_v37 = vmul.f32 %v1635_v31, %v2238_v35  ;;  %1656 = vpow2.f32 %v790_v22  ;;  %v906_v53 = vmul.f32 %v874_v11, %v2254_v2  ;;  %1025 = vmatmul.mubr.f32.vlgmr.msra.gmra.mrb[32].mxu1 %v904_v44 }
 0x1e2   : > { %v1639_v38 = vpop.eup %1638  ;;  %v876_v52 = vmul.f32 %v1637_v33, %v2248_v61  ;;  %1658 = vrcp.f32 %v818_v30 }
 0x1e3   : > { %v1641_v45 = vpop.eup %1640  ;;  %v877_v46 = vmul.f32 %v1639_v38, %v2252_v0  ;;  %v907_v41 = vmul.f32 %v875_v37, %v2257_v6 }
 0x1e4   : > { %v1643_v17 = vpop.eup %1642  ;;  %v819_v54 = vadd.f32 1.0, %v1641_v45  ;;  %v908_v60 = vmul.f32 %v876_v52, %v2267_v21 }
 0x1e5   : > { %v1645_v4 = vpop.eup %1644  ;;  %v820_v36 = vadd.f32 1.0, %v1643_v17  ;;  %v909_v35 = vmul.f32 %v877_v46, %v2271_v24  ;;  %1029 = vmatprep.mubr.f32.mxu1 %v907_v41 }
 0x1e6   : > { %v1647_v2 = vpop.eup %1646  ;;  %v878_v62 = vmul.f32 %v1645_v4, %v2261_v42  ;;  %1660 = vrcp.f32 %v819_v54  ;;  %1030 = vmatmul.mubr.f32.gmra.mrb[34].mxu1 %v906_v53 }
 0x1e7   : > { %v1649_v61 = vpop.eup %1648  ;;  %v879_v13 = vmul.f32 %v1647_v2, %v2265_v39  ;;  %1662 = vrcp.f32 %v820_v36  ;;  %1034 = vmatprep.mubr.f32.mxu1 %v909_v35 }
 0x1e8   : > { %v1651_v0 = vpop.eup %1650  ;;  %v821_v6 = vadd.f32 1.0, %v1649_v61  ;;  %v910_v63 = vmul.f32 %v878_v62, %v2281_v48 }
 0x1e9   : > { %v1653_v21 = vpop.eup %1652  ;;  %v822_v32 = vadd.f32 1.0, %v1651_v0  ;;  %v911_v3 = vmul.f32 %v879_v13, %v2285_v58 }
 0x1ea   : > { %v1655_v24 = vpop.eup %1654  ;;  %v880_v9 = vmul.f32 %v1653_v21, %v2275_v40  ;;  %1664 = vrcp.f32 %v821_v6  ;;  %1035 = vmatmul.mubr.f32.gmra.mrb[36].mxu1 %v908_v60 }
 0x1eb   : > { %v1657_v42 = vpop.eup %1656  ;;  %v881_v51 = vmul.f32 %v1655_v24, %v2279_v47  ;;  %1666 = vrcp.f32 %v822_v32  ;;  %1039 = vmatprep.mubr.f32.mxu1 %v911_v3 }
 0x1ec   : > { %v1659_v39 = vpop.eup %1658  ;;  %v823_v19 = vadd.f32 1.0, %v1657_v42  ;;  %v912_v29 = vmul.f32 %v880_v9, %v2295_v10 }
 0x1ed   : > { %v882_v48 = vmul.f32 %v1659_v39, %v2289_v59  ;;  %v913_v14 = vmul.f32 %v881_v51, %v2299_v18 }
 0x1ee   : > { %1668 = vrcp.f32 %v823_v19  ;;  %1040 = vmatmul.mubr.f32.gmra.mrb[38].mxu1 %v910_v63 }
 0x1ef   : > { %v914_v58 = vmul.f32 %v882_v48, %v2309_v50  ;;  %1044 = vmatprep.mubr.f32.mxu1 %v913_v14 }
 0x1f0   : > { %v1661_v40 = vpop.eup %1660 }
 0x1f1   : > { %v1663_v12 = vpop.eup %1662  ;;  %v883_v16 = vmul.f32 %v1661_v40, %v2293_v34 }
 0x1f2   : > { %v884_v47 = vmul.f32 %v1663_v12, %v2303_v27  ;;  %1045 = vmatmul.mubr.f32.gmra.mrb[40].mxu1 %v912_v29 }
 0x1f3   : > { %v915_v15 = vmul.f32 %v883_v16, %v2312_v7 }
 0x1f4   : > { %v1665_v20 = vpop.eup %1664  ;;  %v916_v10 = vmul.f32 %v884_v47, %v2322_v43 }
 0x1f5   : > { %v1667_v59 = vpop.eup %1666  ;;  %v885_v18 = vmul.f32 %v1665_v20, %v2307_v28  ;;  %1049 = vmatprep.mubr.f32.mxu1 %v915_v15 }
 0x1f6   : > { %v886_v50 = vmul.f32 %v1667_v59, %v2316_v49  ;;  %1050 = vmatmul.mubr.f32.gmra.mrb[42].mxu1 %v914_v58 }
 0x1f7   : > { %v917_v25 = vmul.f32 %v885_v18, %v2326_v55 }
 0x1f8   : > { %v1669_v22 = vpop.eup %1668  ;;  %v918_v34 = vmul.f32 %v886_v50, %v2331_v5 }
 0x1f9   : > { %v887_v27 = vmul.f32 %v1669_v22, %v2320_v57  ;;  %1054 = vmatprep.mubr.f32.mxu1 %v917_v25 }
 0x1fa   : > { %1055 = vmatmul.mubr.f32.gmra.mrb[44].mxu1 %v916_v10 }
 0x1fb   : > { %v919_v7 = vmul.f32 %v887_v27, %v2334_v26 }
 0x1fd   : > { %1059 = vmatprep.mubr.f32.mxu1 %v919_v7 }
 0x1fe   : > { %1060 = vmatmul.mubr.f32.gmra.mrb[46].mxu1 %v918_v34 }
 0x292   : > { %v986_v43 = vpop.f32.mrb[32].mxu0 }
 0x293   : > { %1065 = vst [vmem:[%s2366_s21] sm:$0xff] %v986_v43  ;;  %v988_v28 = vpop.f32.mrb[33].mxu0 }
 0x296   : > { %v991_v49 = vpop.f32.mrb[34].mxu0 }
 0x297   : > { %1066 = vst [vmem:[%s2366_s21 + $0x8] sm:$0xff] %v991_v49  ;;  %v993_v57 = vpop.f32.mrb[35].mxu0 }
 0x29a   : > { %v996_v55 = vpop.f32.mrb[36].mxu0 }
 0x29b   : > { %1067 = vst [vmem:[%s2366_s21 + $0x10] sm:$0xff] %v996_v55  ;;  %v998_v44 = vpop.f32.mrb[37].mxu0 }
 0x2a0   : > { %v1001_v5 = vpop.f32.mrb[38].mxu0 }
 0x2a1   : > { %1068 = vst [vmem:[%s2366_s21 + $0x18] sm:$0xff] %v1001_v5  ;;  %v1003_v23 = vpop.f32.mrb[39].mxu0 }
 0x2a4   : > { %v1006_v56 = vpop.f32.mrb[40].mxu0 }
 0x2a5   : > { %1069 = vst [vmem:[%s2366_s21 + $0x20] sm:$0xff] %v1006_v56  ;;  %v1008_v8 = vpop.f32.mrb[41].mxu0 }
 0x2a8   : > { %v1011_v26 = vpop.f32.mrb[42].mxu0 }
 0x2a9   : > { %1070 = vst [vmem:[%s2366_s21 + $0x28] sm:$0xff] %v1011_v26  ;;  %v1013_v1 = vpop.f32.mrb[43].mxu0 }
 0x2ac   : > { %v1016_v11 = vpop.f32.mrb[44].mxu0 }
 0x2ad   : > { %1071 = vst [vmem:[%s2366_s21 + $0x30] sm:$0xff] %v1016_v11  ;;  %v1018_v31 = vpop.f32.mrb[45].mxu0 }
 0x2b0   : > { %v1021_v30 = vpop.f32.mrb[46].mxu0 }
 0x2b1   : > { %1072 = vst [vmem:[%s2366_s21 + $0x38] sm:$0xff] %v1021_v30  ;;  %v1023_v33 = vpop.f32.mrb[47].mxu0 }
 0x2b4   : > { %v1026_v37 = vpop.f32.mrb[32].mxu1 }
 0x2b5   : > { %1073 = vst [vmem:[%s2366_s21 + $0x40] sm:$0xff] %v1026_v37  ;;  %v1028_v53 = vpop.f32.mrb[33].mxu1 }
 0x2b9   : > { %v1031_v38 = vpop.f32.mrb[34].mxu1 }
 0x2ba   : > { %1074 = vst [vmem:[%s2366_s21 + $0x48] sm:$0xff] %v1031_v38  ;;  %v1033_v52 = vpop.f32.mrb[35].mxu1 }
 0x2bd   : > { %v1036_v45 = vpop.f32.mrb[36].mxu1 }
 0x2be   : > { %1075 = vst [vmem:[%s2366_s21 + $0x50] sm:$0xff] %v1036_v45  ;;  %v1038_v46 = vpop.f32.mrb[37].mxu1 }
 0x2c1   : > { %v1041_v41 = vpop.f32.mrb[38].mxu1 }
 0x2c2   : > { %1076 = vst [vmem:[%s2366_s21 + $0x58] sm:$0xff] %v1041_v41  ;;  %v1043_v17 = vpop.f32.mrb[39].mxu1 }
 0x2c5   : > { %v1046_v54 = vpop.f32.mrb[40].mxu1 }
 0x2c6   : > { %1077 = vst [vmem:[%s2366_s21 + $0x60] sm:$0xff] %v1046_v54  ;;  %v1048_v60 = vpop.f32.mrb[41].mxu1 }
 0x2c9   : > { %v1051_v4 = vpop.f32.mrb[42].mxu1 }
 0x2ca   : > { %1078 = vst [vmem:[%s2366_s21 + $0x68] sm:$0xff] %v1051_v4  ;;  %v1053_v36 = vpop.f32.mrb[43].mxu1 }
 0x2cd   : > { %v1056_v35 = vpop.f32.mrb[44].mxu1 }
 0x2ce   : > { %1079 = vst [vmem:[%s2366_s21 + $0x70] sm:$0xff] %v1056_v35  ;;  %v1058_v2 = vpop.f32.mrb[45].mxu1 }
 0x2d1   : > { %v1061_v62 = vpop.f32.mrb[46].mxu1 }
 0x2d2   : > { %1080 = vst [vmem:[%s2366_s21 + $0x78] sm:$0xff] %v1061_v62  ;;  %v1063_v61 = vpop.f32.mrb[47].mxu1 }
 0x2d3   : > { %1797 = shalt.err (!%p1794_p4)
}
 0x2d4   : > { %s1798_s7 = scalar_lea.hbm %s2388_s28, 2048  ;;  %s1802_s24 = scalar_lea.hbm %s2439_s4, 4096 }
 0x2d5   : > { %p1799_p9 = scmp.ne.s32.totalorder %s2388_s28, %s1798_s7  ;;  %p1803_p8 = scmp.lt.u32.totalorder %s2388_s28, %s2439_s4 }
 0x2d6   : > { %p1804_p13 = scmp.lt.u32.totalorder %s1802_s24, %s1798_s7  ;;  %p1806_p10 = scmp.lt.u32.totalorder %s1798_s7, %s2388_s28 }
 0x2d7   : > { %p1800_p0 = pnand %p1799_p9, %p2047_p5 }
 0x2d8   : > { %p1805_p6 = por %p1804_p13, %p1803_p8 }
 0x2d9   : > { %p1801_p11 = pneg %p1800_p0 }
 0x2da   : > { %p1807_p3 = por %p1806_p10, %p1805_p6 }
 0x2dc   : > { %p1808_p7 = pnand %p1807_p3, %p1801_p11 }
 0x2de   : > { %1811 = shalt.err (!%p1808_p7)
}
 0x2df   : > { %s1869_s21 = smov 128   ;;  %s1870_s23 = smov 8  }
 0x2e0   : > { %1473 = dma.vmem_to_hbm [thread:$0]  (%p2047_p5), %s2390_s14, 2048, %s2388_s28, %s1082_s11, %s1869_s21, %s1869_s21, %s1870_s23  }
 0x2e1 PF: > { %s1110_s20 = sand.u32 1, %s1846_s15   ;;  %p2457_p12 = scmp.ne.s32.totalorder %s2444_s22, 0 }
 0x2e2   : > { %p2458_p1 = scmp.ge.s32.totalorder %s1858_s18, 2  ;;  %s1111_s8 = scalar_lea.sflag [#allocation4], %s1110_s20 }
 0x2e4   : > { %p1490_p2 = pnand %p2458_p1, %p2457_p12 }
 0x2e6   : > { %1841 = dma.done.wait (!%p1490_p2), %s1111_s8, 2048  }
 0x2e7   : > { %1843 = vsyncadd (!%p1490_p2), %s1111_s8, 4294965248  ;;  %p19_p4 = scmp.ge.s32.totalorder %s2033_s12, 4   ;;  %s2459_s15 = smov %s1850_s16 }
 0x2e8   : > { %s2460_s16 = smov %s1854_s17  ;;  %s2461_s17 = smov %s2043_s27 }
 0x2e9   : > { %s2462_s18 = smov %s2033_s12  ;;  %21 = sbr.rel (!%p19_p4) target bundleno = 7 (0x7), region = 93 }
 0x2f0   :  { %1116 = vsyncpa [#allocation3], 1 }
 0x2f1   :  { %1118 = vsyncpa [#allocation3 + $0x1], 1 }
 0x2f2   :  { %1119 = vsyncpa [#allocation6], 1 }
 0x2f3   :  { %1120 = vsyncpa [#allocation9], 1 }
 0x2f4   :  { %1121 = vsyncpa [#allocation4], 1 }
 0x2f5   :  { %1123 = vsyncpa [#allocation4 + $0x1], 1 }

</bundles_post_ra>
